<compile_context>
chip_gen: v5e
topology: v5e:2x2
jax: 0.10.0
libtpu: 0.0.40
codegen_flags: <defaults>
</compile_context>

<pallas_src>
import functools

import jax
import jax.numpy as jnp
from jax.experimental import pallas as pl
from jax.experimental.pallas import tpu as pltpu


def _resblock_kernel(x_ref, mask_ref, w1_ref, w2_ref, o_ref, scr_ref, *, H, W):
    # x_ref    : (1, C, H*W)  one image, channels on sublanes, spatial on lanes
    # mask_ref : (9*C+1, H*W) f32 {0,1} halo-validity mask per stacked row
    #                         (last row = 1 for the bias "ones" tap)
    # w*_ref   : (C, 9*C+1)   bf16 conv weights with BN scale folded in and the
    #                         folded BN bias as the last column
    # o_ref    : (1, C, H*W)
    # scr_ref  : (9*C+1, H*W) f32 VMEM scratch holding the im2col slab
    HW = H * W
    C = x_ref.shape[1]

    x = x_ref[0]                                   # (C, HW) f32
    mask = mask_ref[...]                           # (9C+1, HW) f32

    # Bias "tap": constant ones row.  Written once; both convs reuse it.
    scr_ref[pl.ds(9 * C, 1), :] = jnp.ones((1, HW), jnp.float32)

    def conv_bn_act(inp, w_ref):
        # Stage the 9 shifted tap slabs ("im2col" on the sublane axis) into
        # the scratch.  The lane-axis roll wraps across image borders; the
        # precomputed mask zeroes exactly those wrapped positions, which
        # reproduces the zero-padded 3x3 conv.
        for dy in range(3):
            for dx in range(3):
                t = dy * 3 + dx
                delta = (dy - 1) * W + (dx - 1)    # flattened spatial offset
                if delta == 0:
                    tap = inp
                else:
                    tap = pltpu.roll(inp, (-delta) % HW, axis=1)
                scr_ref[pl.ds(t * C, C), :] = tap
        # One deep matmul on the MXU in bf16: (C, 9C+1) @ (9C+1, HW), f32 acc.
        stacked = (scr_ref[...] * mask).astype(jnp.bfloat16)
        y = jnp.dot(w_ref[...], stacked, preferred_element_type=jnp.float32)
        # Dropout (eval mode) == identity; activation = ReLU.
        return jnp.maximum(y, 0.0)

    y1 = conv_bn_act(x, w1_ref)
    y2 = conv_bn_act(y1, w2_ref)
    o_ref[0] = x + y2                              # residual add (f32)


def residual_block(x_nchw, params, eps=1e-5):
    """x_nchw: (B, C, H, W) float32.  Returns (B, C, H, W)."""
    B, C, H, W = x_nchw.shape
    HW = H * W
    K = 9 * C + 1

    w1 = params["w1"].astype(jnp.float32)          # (C, C, 3, 3) torch OIHW
    w2 = params["w2"].astype(jnp.float32)
    g1, be1, m1, v1 = [p.astype(jnp.float32) for p in params["bn1"]]
    g2, be2, m2, v2 = [p.astype(jnp.float32) for p in params["bn2"]]

    # Fold BatchNorm (eval mode) scale into the conv weights, keep only bias.
    def fold(w, g, be, m, v):
        s = g * jax.lax.rsqrt(v + eps)                  # (C,)
        return w * s[:, None, None, None], be - m * s   # scaled weights, bias

    w1f, b1f = fold(w1, g1, be1, m1, v1)
    w2f, b2f = fold(w2, g2, be2, m2, v2)

    # (C, 9*C+1) weights: 9 tap blocks (dy-major / dx-minor, matching the
    # kernel's tap order) + folded-bias column.  Cast to bf16 for the MXU.
    def big_weight(wf, bf):
        cols = [wf[:, :, dy, dx] for dy in range(3) for dx in range(3)]
        cols.append(bf[:, None])
        return jnp.concatenate(cols, axis=1).astype(jnp.bfloat16)   # (C, K)

    w1_big = big_weight(w1f, b1f)
    w2_big = big_weight(w2f, b2f)

    # Precomputed halo-validity masks, one row per stacked im2col row,
    # broadcast over the C input channels of each tap; last row (bias tap)=1.
    r = jnp.arange(H, dtype=jnp.int32)[:, None]
    c = jnp.arange(W, dtype=jnp.int32)[None, :]
    mask_rows = []
    for dy in range(3):
        rv = jnp.logical_and(r + dy - 1 >= 0, r + dy - 1 <= H - 1)
        for dx in range(3):
            cv = jnp.logical_and(c + dx - 1 >= 0, c + dx - 1 <= W - 1)
            m = jnp.logical_and(rv, cv).reshape(1, HW)
            mask_rows.append(jnp.broadcast_to(m, (C, HW)))
    mask_rows.append(jnp.ones((1, HW), dtype=bool))
    mask_full = jnp.concatenate(mask_rows, axis=0).astype(jnp.float32)  # (K,HW)

    # Free, contiguous reshape: NCHW -> (B, C, H*W); H*W is the lane axis.
    x3d = x_nchw.astype(jnp.float32).reshape(B, C, HW)

    out3d = pl.pallas_call(
        functools.partial(_resblock_kernel, H=H, W=W),
        out_shape=jax.ShapeDtypeStruct((B, C, HW), jnp.float32),
        grid=(B,),                                      # one image per step
        in_specs=[
            pl.BlockSpec((1, C, HW), lambda b: (b, 0, 0)),
            pl.BlockSpec((K, HW), lambda b: (0, 0)),
            pl.BlockSpec((C, K), lambda b: (0, 0)),
            pl.BlockSpec((C, K), lambda b: (0, 0)),
        ],
        out_specs=pl.BlockSpec((1, C, HW), lambda b: (b, 0, 0)),
        scratch_shapes=[pltpu.VMEM((K, HW), jnp.float32)],
        compiler_params=pltpu.CompilerParams(
            dimension_semantics=("parallel",)),         # 2 TCs on v7x
    )(x3d, mask_full, w1_big, w2_big)

    return out3d.reshape(B, C, H, W)


def _reference(x, params, eps=1e-5):
    """Pure-JAX reference (inference semantics) for correctness checking."""
    w1, w2 = params["w1"], params["w2"]
    g1, be1, m1, v1 = params["bn1"]
    g2, be2, m2, v2 = params["bn2"]

    def conv(x, w):
        return jax.lax.conv_general_dilated(
            x, w, window_strides=(1, 1), padding=((1, 1), (1, 1)),
            dimension_numbers=("NCHW", "OIHW", "NCHW"),
            precision=jax.lax.Precision.HIGHEST)

    def bn(x, g, b, m, v):
        s = (g * jax.lax.rsqrt(v + eps))[None, :, None, None]
        return (x - m[None, :, None, None]) * s + b[None, :, None, None]

    y = jax.nn.relu(bn(conv(x, w1), g1, be1, m1, v1))
    y = jax.nn.relu(bn(conv(y, w2), g2, be2, m2, v2))
    return x + y


def init_params(key, channels):
    k = jax.random.split(key, 6)
    w1 = 0.1 * jax.random.normal(k[0], (channels, channels, 3, 3), jnp.float32)
    w2 = 0.1 * jax.random.normal(k[1], (channels, channels, 3, 3), jnp.float32)
    g1 = 1.0 + 0.1 * jax.random.normal(k[2], (channels,), jnp.float32)
    be1 = 0.1 * jax.random.normal(k[3], (channels,), jnp.float32)
    m1 = 0.05 * jax.random.normal(k[4], (channels,), jnp.float32)
    v1 = 1.0 + 0.1 * jnp.abs(jax.random.normal(k[5], (channels,), jnp.float32))
    g2, be2, m2, v2 = g1 * 0.9, be1 * 0.5, m1 * -1.0, v1 * 1.1
    return {"w1": w1, "w2": w2,
            "bn1": (g1, be1, m1, v1),
            "bn2": (g2, be2, m2, v2)}


if __name__ == "__main__":
    # TODO(synk): get_act(act_type) is not defined in the snippet -- ReLU is
    # assumed; training-mode Dropout / BatchNorm (batch stats) not implemented.
    key = jax.random.PRNGKey(0)
    kx, kp = jax.random.split(key)

    B, C, H, W = 2, 4, 16, 16
    x = jax.random.normal(kx, (B, C, H, W), jnp.float32)
    params = init_params(kp, C)

    out = residual_block(x, params)
    jax.block_until_ready(out)
    assert out.shape == (B, C, H, W)

    ref = _reference(x, params)
    max_err = float(jnp.max(jnp.abs(out - ref)))
    # bf16 MXU operands -> keep the loose-but-adequate 3e-2 tolerance.
    assert max_err < 3e-2, f"mismatch vs reference: max abs err = {max_err}"

    print("KERNEL_OK")
</pallas_src>

<mosaic_0001>
module attributes {stable_mosaic.version = 11 : i64} {
  func.func @_resblock_kernel(%arg0: i32, %arg1: memref<1x4x256xf32, #tpu.memory_space<vmem>>, %arg2: memref<37x256xf32, #tpu.memory_space<vmem>>, %arg3: memref<4x37xbf16, #tpu.memory_space<vmem>>, %arg4: memref<4x37xbf16, #tpu.memory_space<vmem>>, %arg5: memref<1x4x256xf32, #tpu.memory_space<vmem>>, %arg6: memref<37x256xf32, #tpu.memory_space<vmem>>) attributes {dimension_semantics = [#tpu.dimension_semantics<parallel>], iteration_bounds = array<i64: 2>, scalar_prefetch = 0 : i64, scratch_operands = 1 : i64, tpu.core_type = #tpu.core_type<tc>, window_params = [{transform_indices = @transform_0, window_bounds = array<i64: 1, 4, 256>}, {pipeline_mode = #tpu.pipeline_mode<synchronous>, transform_indices = @transform_1, window_bounds = array<i64: 37, 256>}, {pipeline_mode = #tpu.pipeline_mode<synchronous>, transform_indices = @transform_2, window_bounds = array<i64: 4, 37>}, {pipeline_mode = #tpu.pipeline_mode<synchronous>, transform_indices = @transform_3, window_bounds = array<i64: 4, 37>}, {transform_indices = @transform_4, window_bounds = array<i64: 1, 4, 256>}]} {
    %c0 = arith.constant 0 : index
    %c0_0 = arith.constant 0 : index
    %c0_1 = arith.constant 0 : index
    %0 = vector.load %arg1[%c0, %c0_0, %c0_1] : memref<1x4x256xf32, #tpu.memory_space<vmem>>, vector<1x4x256xf32>
    %1 = vector.shape_cast %0 : vector<1x4x256xf32> to vector<4x256xf32>
    %c0_2 = arith.constant 0 : index
    %c0_3 = arith.constant 0 : index
    %2 = vector.load %arg2[%c0_2, %c0_3] : memref<37x256xf32, #tpu.memory_space<vmem>>, vector<37x256xf32>
    %cst = arith.constant 1.000000e+00 : f32
    %3 = vector.broadcast %cst : f32 to vector<1x256xf32>
    %c36 = arith.constant 36 : index
    %c0_4 = arith.constant 0 : index
    %4 = vector.load %arg6[%c36, %c0_4] : memref<37x256xf32, #tpu.memory_space<vmem>>, vector<1x256xf32>
    tpu.vector_store %arg6[%c36, %c0_4], %3 {strides = array<i32>} : memref<37x256xf32, #tpu.memory_space<vmem>>, vector<1x256xf32>,
    %c17_i32 = arith.constant 17 : i32
    %5 = tpu.dynamic_rotate %1 by %c17_i32 dim 1 : vector<4x256xf32>, i32 -> vector<4x256xf32>
    %c0_5 = arith.constant 0 : index
    %c0_6 = arith.constant 0 : index
    %6 = vector.load %arg6[%c0_5, %c0_6] : memref<37x256xf32, #tpu.memory_space<vmem>>, vector<4x256xf32>
    tpu.vector_store %arg6[%c0_5, %c0_6], %5 {strides = array<i32>} : memref<37x256xf32, #tpu.memory_space<vmem>>, vector<4x256xf32>,
    %c16_i32 = arith.constant 16 : i32
    %7 = tpu.dynamic_rotate %1 by %c16_i32 dim 1 : vector<4x256xf32>, i32 -> vector<4x256xf32>
    %c4 = arith.constant 4 : index
    %c0_7 = arith.constant 0 : index
    %8 = vector.load %arg6[%c4, %c0_7] : memref<37x256xf32, #tpu.memory_space<vmem>>, vector<4x256xf32>
    tpu.vector_store %arg6[%c4, %c0_7], %7 {strides = array<i32>} : memref<37x256xf32, #tpu.memory_space<vmem>>, vector<4x256xf32>,
    %c15_i32 = arith.constant 15 : i32
    %9 = tpu.dynamic_rotate %1 by %c15_i32 dim 1 : vector<4x256xf32>, i32 -> vector<4x256xf32>
    %c8 = arith.constant 8 : index
    %c0_8 = arith.constant 0 : index
    %10 = vector.load %arg6[%c8, %c0_8] : memref<37x256xf32, #tpu.memory_space<vmem>>, vector<4x256xf32>
    tpu.vector_store %arg6[%c8, %c0_8], %9 {strides = array<i32>} : memref<37x256xf32, #tpu.memory_space<vmem>>, vector<4x256xf32>,
    %c1_i32 = arith.constant 1 : i32
    %11 = tpu.dynamic_rotate %1 by %c1_i32 dim 1 : vector<4x256xf32>, i32 -> vector<4x256xf32>
    %c12 = arith.constant 12 : index
    %c0_9 = arith.constant 0 : index
    %12 = vector.load %arg6[%c12, %c0_9] : memref<37x256xf32, #tpu.memory_space<vmem>>, vector<4x256xf32>
    tpu.vector_store %arg6[%c12, %c0_9], %11 {strides = array<i32>} : memref<37x256xf32, #tpu.memory_space<vmem>>, vector<4x256xf32>,
    %c16 = arith.constant 16 : index
    %c0_10 = arith.constant 0 : index
    %13 = vector.load %arg6[%c16, %c0_10] : memref<37x256xf32, #tpu.memory_space<vmem>>, vector<4x256xf32>
    tpu.vector_store %arg6[%c16, %c0_10], %1 {strides = array<i32>} : memref<37x256xf32, #tpu.memory_space<vmem>>, vector<4x256xf32>,
    %c255_i32 = arith.constant 255 : i32
    %14 = tpu.dynamic_rotate %1 by %c255_i32 dim 1 : vector<4x256xf32>, i32 -> vector<4x256xf32>
    %c20 = arith.constant 20 : index
    %c0_11 = arith.constant 0 : index
    %15 = vector.load %arg6[%c20, %c0_11] : memref<37x256xf32, #tpu.memory_space<vmem>>, vector<4x256xf32>
    tpu.vector_store %arg6[%c20, %c0_11], %14 {strides = array<i32>} : memref<37x256xf32, #tpu.memory_space<vmem>>, vector<4x256xf32>,
    %c241_i32 = arith.constant 241 : i32
    %16 = tpu.dynamic_rotate %1 by %c241_i32 dim 1 : vector<4x256xf32>, i32 -> vector<4x256xf32>
    %c24 = arith.constant 24 : index
    %c0_12 = arith.constant 0 : index
    %17 = vector.load %arg6[%c24, %c0_12] : memref<37x256xf32, #tpu.memory_space<vmem>>, vector<4x256xf32>
    tpu.vector_store %arg6[%c24, %c0_12], %16 {strides = array<i32>} : memref<37x256xf32, #tpu.memory_space<vmem>>, vector<4x256xf32>,
    %c240_i32 = arith.constant 240 : i32
    %18 = tpu.dynamic_rotate %1 by %c240_i32 dim 1 : vector<4x256xf32>, i32 -> vector<4x256xf32>
    %c28 = arith.constant 28 : index
    %c0_13 = arith.constant 0 : index
    %19 = vector.load %arg6[%c28, %c0_13] : memref<37x256xf32, #tpu.memory_space<vmem>>, vector<4x256xf32>
    tpu.vector_store %arg6[%c28, %c0_13], %18 {strides = array<i32>} : memref<37x256xf32, #tpu.memory_space<vmem>>, vector<4x256xf32>,
    %c239_i32 = arith.constant 239 : i32
    %20 = tpu.dynamic_rotate %1 by %c239_i32 dim 1 : vector<4x256xf32>, i32 -> vector<4x256xf32>
    %c32 = arith.constant 32 : index
    %c0_14 = arith.constant 0 : index
    %21 = vector.load %arg6[%c32, %c0_14] : memref<37x256xf32, #tpu.memory_space<vmem>>, vector<4x256xf32>
    tpu.vector_store %arg6[%c32, %c0_14], %20 {strides = array<i32>} : memref<37x256xf32, #tpu.memory_space<vmem>>, vector<4x256xf32>,
    %c0_15 = arith.constant 0 : index
    %c0_16 = arith.constant 0 : index
    %22 = vector.load %arg6[%c0_15, %c0_16] : memref<37x256xf32, #tpu.memory_space<vmem>>, vector<37x256xf32>
    %23 = arith.mulf %22, %2 : vector<37x256xf32>
    %24 = arith.truncf %23 : vector<37x256xf32> to vector<37x256xbf16>
    %c0_17 = arith.constant 0 : index
    %c0_18 = arith.constant 0 : index
    %25 = vector.load %arg3[%c0_17, %c0_18] : memref<4x37xbf16, #tpu.memory_space<vmem>>, vector<4x37xbf16>
    %cst_19 = arith.constant dense<0.000000e+00> : vector<4x256xf32>
    %26 = tpu.matmul %25, %24, %cst_19 {dimension_numbers = #tpu.dot_dimension_numbers<[1], [0], [0], [1], [0, 0, 1, 1], [], []>} : vector<4x37xbf16>, vector<37x256xbf16>, vector<4x256xf32> -> vector<4x256xf32>
    %cst_20 = arith.constant 0.000000e+00 : f32
    %27 = vector.broadcast %cst_20 : f32 to vector<4x256xf32>
    %28 = arith.maximumf %26, %27 : vector<4x256xf32>
    %c17_i32_21 = arith.constant 17 : i32
    %29 = tpu.dynamic_rotate %28 by %c17_i32_21 dim 1 : vector<4x256xf32>, i32 -> vector<4x256xf32>
    %c0_22 = arith.constant 0 : index
    %c0_23 = arith.constant 0 : index
    %30 = vector.load %arg6[%c0_22, %c0_23] : memref<37x256xf32, #tpu.memory_space<vmem>>, vector<4x256xf32>
    tpu.vector_store %arg6[%c0_22, %c0_23], %29 {strides = array<i32>} : memref<37x256xf32, #tpu.memory_space<vmem>>, vector<4x256xf32>,
    %c16_i32_24 = arith.constant 16 : i32
    %31 = tpu.dynamic_rotate %28 by %c16_i32_24 dim 1 : vector<4x256xf32>, i32 -> vector<4x256xf32>
    %c4_25 = arith.constant 4 : index
    %c0_26 = arith.constant 0 : index
    %32 = vector.load %arg6[%c4_25, %c0_26] : memref<37x256xf32, #tpu.memory_space<vmem>>, vector<4x256xf32>
    tpu.vector_store %arg6[%c4_25, %c0_26], %31 {strides = array<i32>} : memref<37x256xf32, #tpu.memory_space<vmem>>, vector<4x256xf32>,
    %c15_i32_27 = arith.constant 15 : i32
    %33 = tpu.dynamic_rotate %28 by %c15_i32_27 dim 1 : vector<4x256xf32>, i32 -> vector<4x256xf32>
    %c8_28 = arith.constant 8 : index
    %c0_29 = arith.constant 0 : index
    %34 = vector.load %arg6[%c8_28, %c0_29] : memref<37x256xf32, #tpu.memory_space<vmem>>, vector<4x256xf32>
    tpu.vector_store %arg6[%c8_28, %c0_29], %33 {strides = array<i32>} : memref<37x256xf32, #tpu.memory_space<vmem>>, vector<4x256xf32>,
    %c1_i32_30 = arith.constant 1 : i32
    %35 = tpu.dynamic_rotate %28 by %c1_i32_30 dim 1 : vector<4x256xf32>, i32 -> vector<4x256xf32>
    %c12_31 = arith.constant 12 : index
    %c0_32 = arith.constant 0 : index
    %36 = vector.load %arg6[%c12_31, %c0_32] : memref<37x256xf32, #tpu.memory_space<vmem>>, vector<4x256xf32>
    tpu.vector_store %arg6[%c12_31, %c0_32], %35 {strides = array<i32>} : memref<37x256xf32, #tpu.memory_space<vmem>>, vector<4x256xf32>,
    %c16_33 = arith.constant 16 : index
    %c0_34 = arith.constant 0 : index
    %37 = vector.load %arg6[%c16_33, %c0_34] : memref<37x256xf32, #tpu.memory_space<vmem>>, vector<4x256xf32>
    tpu.vector_store %arg6[%c16_33, %c0_34], %28 {strides = array<i32>} : memref<37x256xf32, #tpu.memory_space<vmem>>, vector<4x256xf32>,
    %c255_i32_35 = arith.constant 255 : i32
    %38 = tpu.dynamic_rotate %28 by %c255_i32_35 dim 1 : vector<4x256xf32>, i32 -> vector<4x256xf32>
    %c20_36 = arith.constant 20 : index
    %c0_37 = arith.constant 0 : index
    %39 = vector.load %arg6[%c20_36, %c0_37] : memref<37x256xf32, #tpu.memory_space<vmem>>, vector<4x256xf32>
    tpu.vector_store %arg6[%c20_36, %c0_37], %38 {strides = array<i32>} : memref<37x256xf32, #tpu.memory_space<vmem>>, vector<4x256xf32>,
    %c241_i32_38 = arith.constant 241 : i32
    %40 = tpu.dynamic_rotate %28 by %c241_i32_38 dim 1 : vector<4x256xf32>, i32 -> vector<4x256xf32>
    %c24_39 = arith.constant 24 : index
    %c0_40 = arith.constant 0 : index
    %41 = vector.load %arg6[%c24_39, %c0_40] : memref<37x256xf32, #tpu.memory_space<vmem>>, vector<4x256xf32>
    tpu.vector_store %arg6[%c24_39, %c0_40], %40 {strides = array<i32>} : memref<37x256xf32, #tpu.memory_space<vmem>>, vector<4x256xf32>,
    %c240_i32_41 = arith.constant 240 : i32
    %42 = tpu.dynamic_rotate %28 by %c240_i32_41 dim 1 : vector<4x256xf32>, i32 -> vector<4x256xf32>
    %c28_42 = arith.constant 28 : index
    %c0_43 = arith.constant 0 : index
    %43 = vector.load %arg6[%c28_42, %c0_43] : memref<37x256xf32, #tpu.memory_space<vmem>>, vector<4x256xf32>
    tpu.vector_store %arg6[%c28_42, %c0_43], %42 {strides = array<i32>} : memref<37x256xf32, #tpu.memory_space<vmem>>, vector<4x256xf32>,
    %c239_i32_44 = arith.constant 239 : i32
    %44 = tpu.dynamic_rotate %28 by %c239_i32_44 dim 1 : vector<4x256xf32>, i32 -> vector<4x256xf32>
    %c32_45 = arith.constant 32 : index
    %c0_46 = arith.constant 0 : index
    %45 = vector.load %arg6[%c32_45, %c0_46] : memref<37x256xf32, #tpu.memory_space<vmem>>, vector<4x256xf32>
    tpu.vector_store %arg6[%c32_45, %c0_46], %44 {strides = array<i32>} : memref<37x256xf32, #tpu.memory_space<vmem>>, vector<4x256xf32>,
    %c0_47 = arith.constant 0 : index
    %c0_48 = arith.constant 0 : index
    %46 = vector.load %arg6[%c0_47, %c0_48] : memref<37x256xf32, #tpu.memory_space<vmem>>, vector<37x256xf32>
    %47 = arith.mulf %46, %2 : vector<37x256xf32>
    %48 = arith.truncf %47 : vector<37x256xf32> to vector<37x256xbf16>
    %c0_49 = arith.constant 0 : index
    %c0_50 = arith.constant 0 : index
    %49 = vector.load %arg4[%c0_49, %c0_50] : memref<4x37xbf16, #tpu.memory_space<vmem>>, vector<4x37xbf16>
    %cst_51 = arith.constant dense<0.000000e+00> : vector<4x256xf32>
    %50 = tpu.matmul %49, %48, %cst_51 {dimension_numbers = #tpu.dot_dimension_numbers<[1], [0], [0], [1], [0, 0, 1, 1], [], []>} : vector<4x37xbf16>, vector<37x256xbf16>, vector<4x256xf32> -> vector<4x256xf32>
    %cst_52 = arith.constant 0.000000e+00 : f32
    %51 = vector.broadcast %cst_52 : f32 to vector<4x256xf32>
    %52 = arith.maximumf %50, %51 : vector<4x256xf32>
    %53 = arith.addf %1, %52 : vector<4x256xf32>
    %c0_53 = arith.constant 0 : index
    %c0_54 = arith.constant 0 : index
    %c0_55 = arith.constant 0 : index
    %54 = vector.load %arg5[%c0_53, %c0_54, %c0_55] : memref<1x4x256xf32, #tpu.memory_space<vmem>>, vector<1x4x256xf32>
    %55 = vector.shape_cast %54 : vector<1x4x256xf32> to vector<4x256xf32>
    %56 = vector.shape_cast %53 : vector<4x256xf32> to vector<1x4x256xf32>
    tpu.vector_store %arg5[%c0_53, %c0_54, %c0_55], %56 {strides = array<i32>} : memref<1x4x256xf32, #tpu.memory_space<vmem>>, vector<1x4x256xf32>,
    return
  }
  func.func @transform_0(%arg0: i32) -> (i32, i32, i32) {
    %c0_i32 = arith.constant 0 : i32
    %c0_i32_0 = arith.constant 0 : i32
    %c0_i32_1 = arith.constant 0 : i32
    return %arg0, %c0_i32, %c0_i32_0 : i32, i32, i32
  }
  func.func @transform_1(%arg0: i32) -> (i32, i32) {
    %c0_i32 = arith.constant 0 : i32
    %c0_i32_0 = arith.constant 0 : i32
    %c0_i32_1 = arith.constant 0 : i32
    return %c0_i32, %c0_i32_0 : i32, i32
  }
  func.func @transform_2(%arg0: i32) -> (i32, i32) {
    %c0_i32 = arith.constant 0 : i32
    %c0_i32_0 = arith.constant 0 : i32
    %c0_i32_1 = arith.constant 0 : i32
    return %c0_i32, %c0_i32_0 : i32, i32
  }
  func.func @transform_3(%arg0: i32) -> (i32, i32) {
    %c0_i32 = arith.constant 0 : i32
    %c0_i32_0 = arith.constant 0 : i32
    %c0_i32_1 = arith.constant 0 : i32
    return %c0_i32, %c0_i32_0 : i32, i32
  }
  func.func @transform_4(%arg0: i32) -> (i32, i32, i32) {
    %c0_i32 = arith.constant 0 : i32
    %c0_i32_0 = arith.constant 0 : i32
    %c0_i32_1 = arith.constant 0 : i32
    return %arg0, %c0_i32, %c0_i32_0 : i32, i32, i32
  }
}

</mosaic_0001>

<bundles_post_ra>
// kernel: tpu_custom_call.1
= control target key start
LH: loop header
LB: loop body
LE: loop exit
PB: predicated region body
PF: predicated region fallthrough
CT: control target
= control target key end

     0   :  { %9 = vsyncpa [#allocation4], 0  ;;  %s1373_s0 = inlined_call_operand.hbm [shape: f32[2,4,256], index: 0, kind: input, shape index: {}]   ;;  %s1374_s1 = inlined_call_operand.hbm [shape: f32[37,256], index: 1, kind: input, shape index: {}]   ;;  %s1375_s2 = inlined_call_operand.hbm [shape: bf16[4,37], index: 2, kind: input, shape index: {}]   ;;  %s1376_s3 = inlined_call_operand.vmem [shape: bf16[4,37], index: 3, kind: input, shape index: {}]   ;;  %s1377_s4 = inlined_call_operand.hbm [shape: f32[2,4,256], index: 4, kind: output, shape index: {}]  }
   0x1   :  { %11 = vsyncpa [#allocation4 + $0x1], 0 }
   0x2   :  { %12 = vsyncpa [#allocation7], 0 }
   0x3   :  { %13 = vsyncpa [#allocation5], 0 }
   0x4   :  { %15 = vsyncpa [#allocation5 + $0x1], 0  ;;  %s1053_s15 = smov 0   ;;  %s1055_s16 = smov 0  }
   0x5   :  { %s1057_s17 = smov 0   ;;  %s1059_s18 = smov 0  }
   0x6 LB: > { %s152_s21 = sshll.u32 %s1374_s1, 4  ;;  %s1077_s22 = sadd.s32 4294967295, %s1012_s18   ;;  %s1012_s18 = sphi %s1059_s18, %s1388_s18   ;;  %s1008_s17 = sphi %s1057_s17, %s1387_s17   ;;  %s1004_s16 = sphi %s1055_s16, %s1386_s16   ;;  %s1000_s15 = sphi %s1053_s15, %s1385_s15   ;;  %s153_s21 = int_to_ptr.hbm [resolvable:$true] %s152_s21 }
   0x7   : > { %p750_p0 = scmp.ge.s32.totalorder %s1012_s18, 1  ;;  %p42_p1 = scmp.eq.s32.totalorder %s1077_s22, 0 }
   0x8   : > { %p141_p2 = scmp.lt.s32.totalorder %s1012_s18, 3  ;;  %s1014_s24 = smov [#allocation6]  }
   0x9   : > { %s154_s25 = sshll.u32 %s1014_s24, 4  ;;  %s167_s28 = sshll.u32 %s1375_s2, 4  ;;  %s155_s25 = int_to_ptr.vmem [resolvable:$true] %s154_s25  ;;  %s168_s28 = int_to_ptr.hbm [resolvable:$true] %s167_s28 }
   0xa   : > { %p1082_p3 = pnand %p750_p0, %p141_p2  ;;  %s1015_s29 = smov [#allocation8]  }
   0xb   : > { %s169_s30 = sshll.u32 %s1015_s29, 4  ;;  %s1016_s5 = smov 256   ;;  %s170_s30 = int_to_ptr.vmem [resolvable:$true] %s169_s30 }
   0xc   : > { %p785_p4 = pneg %p1082_p3  ;;  %s1017_s6 = smov 16  }
   0xd   : > { %s749_s7 = sadd.s32 4294967294, %s1012_s18   ;;  %s1096_s8 = sadd.s32 1, %s1012_s18  }
   0xe   : > { %p786_p6 = pnand %p785_p4, %p42_p1  ;;  %s25_s9 = ssub.s32 %s1012_s18, %s1096_s8 }
   0xf   : > { %s28_s10 = sadd.s32 1, %s1008_s17  ;;  %p26_p7 = scmp.eq.s32.totalorder %s25_s9, 0 }
  0x10   : > { %788 = dma.hbm_to_vmem [thread:$0]  (!%p786_p6), %s153_s21, 1280, %s155_s25, [#allocation7], %s1016_s5, %s1016_s5, %s1017_s6  }
  0x11   : > { %791 = dma.hbm_to_vmem [thread:$0]  (!%p786_p6), %s168_s28, 32, %s170_s30, [#allocation7]  }
  0x12   : > { %p35_p8 = scmp.ne.s32.totalorder %s1008_s17, %s1004_s16  ;;  %p36_p9 = scmp.eq.s32.totalorder %s1012_s18, 0 }
  0x13   : > { %p41_p10 = scmp.ne.s32.totalorder %s1004_s16, %s1000_s15  ;;  %p128_p13 = scmp.eq.s32.totalorder %s1077_s22, 1 }
  0x14   : > { %s1107_s11 = scalar_select %p26_p7, %s1008_s17, %s28_s10  }
  0x15   : > { %p1109_p11 = por %p36_p9, %p35_p8  ;;  %p1115_p12 = por %p42_p1, %p41_p10 }
  0x16   : > { %p134_p0 = scmp.eq.s32.totalorder %s749_s7, 1  ;;  %p802_p2 = scmp.lt.s32.totalorder %s1012_s18, 2 }
  0x17   : > { %s183_s14 = sand.u32 1, %s1008_s17   ;;  %p1122_p4 = por %p128_p13, %p35_p8 }
  0x18   : > { %p1126_p6 = por %p134_p0, %p41_p10  ;;  %s754_s21 = sshll.u32 %s183_s14, 3 }
  0x19   : > { %s771_s24 = sshll.u32 %s1012_s18, 3  ;;  %s187_s28 = scalar_lea.vmem [#allocation3], %s754_s21 }
  0x1a   : > { %s192_s27 = scalar_lea.hbm %s1373_s0, %s771_s24  ;;  %s196_s29 = sshll.u32 %s187_s28, 4  ;;  %s197_s29 = int_to_ptr.vmem [resolvable:$true] %s196_s29 }
  0x1b   : > { %s194_s30 = sshll.u32 %s192_s27, 4  ;;  %p1136_p7 = pnand %p802_p2, %p1109_p11  ;;  %s195_s30 = int_to_ptr.hbm [resolvable:$true] %s194_s30 }
  0x1c   : > { %s184_s6 = scalar_lea.sflag [#allocation4], %s183_s14  ;;  %s912_s7 = sshra.s32 %s195_s30, 4  ;;  %s913_s7 = int_to_ptr.hbm [resolvable:$true] %s912_s7 }
  0x1d   : > { %s914_s9 = scalar_lea.hbm %s913_s7, 8  ;;  %p916_p9 = pneg %p1136_p7 }
  0x1e   : > { %p915_p8 = scmp.ne.s32.totalorder %s913_s7, %s914_s9  ;;  %s919_s24 = scalar_lea.hbm %s1373_s0, 16 }
  0x1f   : > { %p920_p11 = scmp.lt.s32.totalorder %s913_s7, %s1373_s0  ;;  %p921_p0 = scmp.lt.s32.totalorder %s919_s24, %s914_s9 }
  0x20   : > { %p917_p10 = pnand %p916_p9, %p915_p8 }
  0x21   : > { %p922_p2 = por %p921_p0, %p920_p11 }
  0x22   : > { %p918_p13 = pneg %p917_p10 }
  0x24   : > { %p923_p5 = pnand %p922_p2, %p918_p13 }
  0x26   : > { %926 = shalt.err (!%p923_p5)
}
  0x27   : > { %795 = dma.hbm_to_vmem [thread:$0]  (!%p1136_p7), %s195_s30, 128, %s197_s29, %s184_s6  }
  0x28   : > { %205 = sbr.rel (%p1082_p3) target bundleno = 720 (0x2d0), region = 36  ;;  %s1153_s14 = sand.u32 (!%p1082_p3), 1, %s1004_s16  }
  0x29   : > { %s758_s26 = sshll.u32 (!%p1082_p3), %s1153_s14, 3  ;;  %s208_s27 = scalar_lea.sflag (!%p1082_p3), [#allocation4], %s1153_s14 }
  0x2a   : > { %s211_s28 = scalar_lea.vmem (!%p1082_p3), [#allocation3], %s758_s26 }
  0x2d   : > { %987 = dma.done.wait (%p1115_p12), %s208_s27, 128  }
  0x2e   : > { %989 = vsyncadd (%p1115_p12), %s208_s27, 4294967168 }
  0x2f   : > { %991 = dma.done.wait (%p42_p1), [#allocation7], 1312  }
  0x30   : > { %993 = vsyncadd (%p42_p1), [#allocation7], 4294965984  ;;  %v1167_v0 = vld [vmem:[%s211_s28] sm:$0xff]  ;;  %s1018_s23 = smov 16   ;;  %s1019_s13 = smov 1   ;;  %v259_v19 = vlaneseq  ;;  %v1026_v40 = vmov 1.0  }
  0x31   : > { %267 = vst [vmem:[#allocation1] ss:$2 sm:$0xff] %v1167_v0  ;;  %s1020_s29 = smov 127   ;;  %s1021_s30 = smov 113   ;;  %vm443_vm7 = vcmask 1041408   ;;  %vm444_vm9 = vcmask 1042432  }
  0x32   : > { %s1022_s5 = smov 112   ;;  %s1023_s6 = smov 111   ;;  %v1194_v20 = vand.u32 127, %v259_v19  ;;  %vm261_vm3 = vcmp.lt.s32.totalorder %v259_v19, 256  ;;  %v1227_v55 = vld [vmem:[#allocation6 + $0x40] sm:$0x1f] }
  0x33   : > { %s1024_s7 = smov 17   ;;  %s1025_s9 = smov 15   ;;  %264 = vst.msk [vmem:[#allocation2 + $0x44] ss:$8 sm:$0x3] %vm261_vm3, %v1026_v40  ;;  %v1027_v57 = vmov 65535  }
  0x34   : > { %vm292_vm0 = vcmp.lt.s32.totalorder %v1194_v20, 16  ;;  %vm326_vm1 = vcmp.lt.s32.totalorder %v1194_v20, 1  ;;  %vm387_vm2 = vcmp.lt.s32.totalorder %v1194_v20, 112  ;;  %vm353_vm4 = vcmp.lt.s32.totalorder %v1194_v20, 127  ;;  %v1229_v59 = vld [vmem:[#allocation6 + $0x48] sm:$0x1f] }
  0x35   : > { %vm373_vm5 = vcmp.lt.s32.totalorder %v1194_v20, 113  ;;  %vm407_vm6 = vcmp.lt.s32.totalorder %v1194_v20, 111  ;;  %vm278_vm8 = vcmp.lt.s32.totalorder %v1194_v20, 17  ;;  %v445_v58 = vsel %vm443_vm7, 4294967295, %v1027_v57  ;;  %s772_s24 = sshll.u32 %s1077_s22, 3  ;;  %s246_s28 = scalar_lea.vmem [#allocation9], %s758_s26 }
  0x36   : > { %vm312_vm10 = vcmp.lt.s32.totalorder %v1194_v20, 15  ;;  %vm439_vm11 = vcmask 302080   ;;  %v597_v20 = vld [vmem:[%s1376_s3] sm:$0x3]  ;;  %s655_s27 = scalar_lea.hbm %s1377_s4, %s772_s24  ;;  %vm638_vm12 = vcmask 1043456   ;;  %s644_s22 = scalar_lea.sflag [#allocation5], %s1153_s14 }
  0x38   : > { %v268_v1 = vld.sshfl [vmem:[#allocation1] sm:$0xff pattern:$0x75316420]  ;;  %v269_v2 = vld.sshfl [vmem:[#allocation1 + $0x8] sm:$0xff pattern:$0x75316420] }
  0x39   : > { %283 = vst [vmem:[#allocation1] ss:$2 sm:$0xff] %v1167_v0 }
  0x40   : > { %v284_v3 = vld.sshfl [vmem:[#allocation1] sm:$0xff pattern:$0x75316420]  ;;  %v285_v4 = vld.sshfl [vmem:[#allocation1 + $0x8] sm:$0xff pattern:$0x75316420] }
  0x41   : > { %303 = vst [vmem:[#allocation1] ss:$2 sm:$0xff] %v1167_v0  ;;  %290 = vrot.lane.b32.xlu0 %v285_v4, %s1018_s23  ;;  %288 = vrot.lane.b32.xlu2 %v284_v3, %s1018_s23  ;;  %v1238_v3 = vld [vmem:[#allocation6 + $0x30] sm:$0xff]  ;;  %v1240_v4 = vsel %vm444_vm9, %v445_v58, 0 }
  0x48   : > { %v304_v5 = vld.sshfl [vmem:[#allocation1] sm:$0xff pattern:$0x75316420]  ;;  %v305_v6 = vld.sshfl [vmem:[#allocation1 + $0x8] sm:$0xff pattern:$0x75316420] }
  0x49   : > { %317 = vst [vmem:[#allocation1] ss:$2 sm:$0xff] %v1167_v0 }
  0x50   : > { %v318_v7 = vld.sshfl [vmem:[#allocation1] sm:$0xff pattern:$0x75316420]  ;;  %v319_v8 = vld.sshfl [vmem:[#allocation1 + $0x8] sm:$0xff pattern:$0x75316420] }
  0x51   : > { %322 = vrot.lane.b32.xlu1 %v318_v7, %s1019_s13  ;;  %337 = vst [vmem:[#allocation1] ss:$2 sm:$0xff] %v1167_v0  ;;  %324 = vrot.lane.b32.xlu2 %v319_v8, %s1019_s13  ;;  %v1243_v8 = vld [vmem:[#allocation6 + $0x28] sm:$0xff] }
  0x58   : > { %v338_v9 = vld.sshfl [vmem:[#allocation1] sm:$0xff pattern:$0x75316420]  ;;  %v339_v10 = vld.sshfl [vmem:[#allocation1 + $0x8] sm:$0xff pattern:$0x75316420] }
  0x59   : > { %342 = vst [vmem:[#allocation2 + $0x20] sm:$0xf] %v338_v9 }
  0x5a   : > { %343 = vst [vmem:[#allocation2 + $0x28] sm:$0xf] %v339_v10  ;;  %v1245_v10 = vld [vmem:[#allocation6 + $0x38] sm:$0xff] }
  0x5b   : > { %344 = vst [vmem:[#allocation1] ss:$2 sm:$0xff] %v1167_v0 }
  0x62   : > { %v345_v11 = vld.sshfl [vmem:[#allocation1] sm:$0xff pattern:$0x75316420]  ;;  %v346_v12 = vld.sshfl [vmem:[#allocation1 + $0x8] sm:$0xff pattern:$0x75316420] }
  0x63   : > { %349 = vrot.lane.b32.xlu1 %v345_v11, %s1020_s29  ;;  %364 = vst [vmem:[#allocation1] ss:$2 sm:$0xff] %v1167_v0 }
  0x6a   : > { %v366_v13 = vld.sshfl [vmem:[#allocation1 + $0x8] sm:$0xff pattern:$0x75316420]  ;;  %v365_v14 = vld.sshfl [vmem:[#allocation1] sm:$0xff pattern:$0x75316420] }
  0x6b   : > { %351 = vrot.lane.b32.xlu1 %v346_v12, %s1020_s29  ;;  %369 = vrot.lane.b32.xlu0 %v365_v14, %s1021_s30  ;;  %378 = vst [vmem:[#allocation1] ss:$2 sm:$0xff] %v1167_v0 }
  0x72   : > { %v379_v15 = vld.sshfl [vmem:[#allocation1] sm:$0xff pattern:$0x75316420]  ;;  %v380_v16 = vld.sshfl [vmem:[#allocation1 + $0x8] sm:$0xff pattern:$0x75316420] }
  0x73   : > { %371 = vrot.lane.b32.xlu1 %v366_v13, %s1021_s30  ;;  %398 = vst [vmem:[#allocation1] ss:$2 sm:$0xff] %v1167_v0  ;;  %383 = vrot.lane.b32.xlu2 %v379_v15, %s1022_s5 }
  0x7a   : > { %v399_v17 = vld.sshfl [vmem:[#allocation1] sm:$0xff pattern:$0x75316420]  ;;  %v400_v18 = vld.sshfl [vmem:[#allocation1 + $0x8] sm:$0xff pattern:$0x75316420] }
  0x7b   : > { %403 = vrot.lane.b32.xlu0 %v399_v17, %s1023_s6  ;;  %385 = vrot.lane.b32.xlu2 %v380_v16, %s1022_s5 }
  0x7c   : > { %274 = vrot.lane.b32.xlu1 %v269_v2, %s1024_s7  ;;  %v1236_v2 = vld [vmem:[#allocation6 + $0x20] sm:$0xff] }
  0x83   : > { %405 = vrot.lane.b32.xlu0 %v400_v18, %s1023_s6  ;;  %308 = vrot.lane.b32.xlu2 %v304_v5, %s1025_s9 }
  0x8b   : > { %272 = vrot.lane.b32.xlu0 %v268_v1, %s1024_s7 }
  0x93   : > { %310 = vrot.lane.b32.xlu0 %v305_v6, %s1025_s9 }
  0x9b   : > { %v289_v21 = vpop.permute.xlu2 %288 }
  0xab   : > { %v325_v28 = vpop.permute.xlu2 %324 }
  0xb3   : > { %v291_v22 = vpop.permute.xlu0 %290 }
  0xb4   : > { %v293_v23 = vsel %vm292_vm0, %v289_v21, %v291_v22  ;;  %v294_v24 = vsel %vm292_vm0, %v291_v22, %v289_v21 }
  0xb5   : > { %v297_v25 = vrot.slane %v294_v24, 4  ;;  %v298_v26 = vrot.slane %v293_v23, 4 }
  0xb7   : > { %301 = vst [vmem:[#allocation2] sm:$0xf0] %v297_v25 }
  0xb8   : > { %302 = vst [vmem:[#allocation2 + $0x8] sm:$0xf0] %v298_v26 }
  0xc3   : > { %v323_v27 = vpop.permute.xlu1 %322 }
  0xc4   : > { %v327_v29 = vsel %vm326_vm1, %v323_v27, %v325_v28  ;;  %v328_v30 = vsel %vm326_vm1, %v325_v28, %v323_v27  ;;  %v1258_v27 = vld [vmem:[#allocation6] sm:$0xff]  ;;  %v1260_v28 = vld [vmem:[#allocation6 + $0x10] sm:$0xff] }
  0xc5   : > { %v331_v31 = vrot.slane %v328_v30, 4  ;;  %v332_v32 = vrot.slane %v327_v29, 4  ;;  %v1262_v30 = vld [vmem:[#allocation6 + $0x8] sm:$0xff] }
  0xc7   : > { %335 = vst [vmem:[#allocation2 + $0x10] sm:$0xf0] %v331_v31  ;;  %v1264_v31 = vld [vmem:[#allocation6 + $0x18] sm:$0xff] }
  0xc8   : > { %336 = vst [vmem:[#allocation2 + $0x18] sm:$0xf0] %v332_v32 }
  0xcd   : > { %v384_v33 = vpop.permute.xlu2 %383 }
  0xd5   : > { %v350_v34 = vpop.permute.xlu1 %349  ;;  %v386_v35 = vpop.permute.xlu2 %385 }
  0xd6   : > { %v388_v36 = vsel %vm387_vm2, %v384_v33, %v386_v35  ;;  %v389_v37 = vsel %vm387_vm2, %v386_v35, %v384_v33 }
  0xd7   : > { %v392_v38 = vrot.slane %v388_v36, 4  ;;  %v393_v39 = vrot.slane %v389_v37, 4 }
  0xd9   : > { %396 = vst [vmem:[#allocation2 + $0x30] sm:$0xf0] %v392_v38 }
  0xda   : > { %397 = vst [vmem:[#allocation2 + $0x38] sm:$0xf0] %v393_v39 }
  0xdd   : > { %v352_v41 = vpop.permute.xlu1 %351  ;;  %v370_v46 = vpop.permute.xlu0 %369 }
  0xde   : > { %v354_v42 = vsel %vm353_vm4, %v350_v34, %v352_v41  ;;  %v355_v43 = vsel %vm353_vm4, %v352_v41, %v350_v34  ;;  %v309_v14 = vpop.permute.xlu2 %308  ;;  %v438_v41 = vld [vmem:[#allocation8] sm:$0x3] }
  0xdf   : > { %v358_v44 = vrot.slane %v354_v42, 4  ;;  %v359_v45 = vrot.slane %v355_v43, 4 }
  0xe1   : > { %362 = vst [vmem:[#allocation2 + $0x20] sm:$0xf0] %v358_v44 }
  0xe2   : > { %363 = vst [vmem:[#allocation2 + $0x28] sm:$0xf0] %v359_v45 }
  0xe5   : > { %v372_v47 = vpop.permute.xlu1 %371 }
  0xe6   : > { %v374_v48 = vsel %vm373_vm5, %v370_v46, %v372_v47  ;;  %v375_v49 = vsel %vm373_vm5, %v372_v47, %v370_v46 }
  0xe7   : > { %376 = vst [vmem:[#allocation2 + $0x30] sm:$0xf] %v374_v48 }
  0xe8   : > { %377 = vst [vmem:[#allocation2 + $0x38] sm:$0xf] %v375_v49  ;;  %v416_v6 = vld [vmem:[#allocation2 + $0x20] sm:$0xff] }
  0xe9   : > { %v417_v11 = vld [vmem:[#allocation2 + $0x28] sm:$0xff]  ;;  %v426_v16 = vmul.f32 %v416_v6, %v1236_v2 }
  0xea   : > { %v427_v19 = vmul.f32 %v417_v11, %v1243_v8 }
  0xed   : > { %v404_v50 = vpop.permute.xlu0 %403 }
  0xee   : > { %v275_v54 = vpop.permute.xlu1 %274  ;;  %v418_v7 = vld [vmem:[#allocation2 + $0x30] sm:$0xff] }
  0xef   : > { %v419_v12 = vld [vmem:[#allocation2 + $0x38] sm:$0xff]  ;;  %v428_v17 = vmul.f32 %v418_v7, %v1238_v3 }
  0xf0   : > { %v429_v21 = vmul.f32 %v419_v12, %v1245_v10 }
  0xf1   : > { %v434_v25 = vpack.c.bf16 %v428_v17, %v426_v16 }
  0xf2   : > { %v435_v26 = vpack.c.bf16 %v429_v21, %v427_v19 }
  0xf5   : > { %v406_v51 = vpop.permute.xlu0 %405 }
  0xf6   : > { %v408_v52 = vsel %vm407_vm6, %v404_v50, %v406_v51  ;;  %v409_v53 = vsel %vm407_vm6, %v406_v51, %v404_v50 }
  0xf7   : > { %410 = vst [vmem:[#allocation2 + $0x40] sm:$0xf] %v408_v52 }
  0xf8   : > { %411 = vst [vmem:[#allocation2 + $0x48] sm:$0xf] %v409_v53 }
  0xfd   : > { %v273_v56 = vpop.permute.xlu0 %272 }
  0xfe   : > { %v279_v60 = vsel %vm278_vm8, %v273_v56, %v275_v54  ;;  %v280_v61 = vsel %vm278_vm8, %v275_v54, %v273_v56  ;;  %v420_v62 = vld [vmem:[#allocation2 + $0x40] sm:$0x1f] }
  0xff   : > { %281 = vst [vmem:[#allocation2] sm:$0xf] %v280_v61  ;;  %v430_v63 = vmul.f32 %v420_v62, %v1227_v55  ;;  %v421_v1 = vld [vmem:[#allocation2 + $0x48] sm:$0x1f] }
 0x100   : > { %282 = vst [vmem:[#allocation2 + $0x8] sm:$0xf] %v279_v60  ;;  %v431_v5 = vmul.f32 %v421_v1, %v1229_v59 }
 0x101   : > { %v436_v9 = vpack.c.bf16 %v430_v63, %v430_v63 }
 0x102   : > { %v437_v13 = vpack.c.bf16 %v431_v5, %v431_v5 }
 0x103   : > { %v448_v15 = vand.u32 %v1240_v4, %v436_v9 }
 0x104   : > { %v451_v18 = vand.u32 %v1240_v4, %v437_v13 }
 0x105   : > { %458 = vmatpush.bf16.msra.mxu0 %v448_v15  ;;  %v311_v22 = vpop.permute.xlu0 %310 }
 0x106   : > { %471 = vmatpush.bf16.msra.mxu1 %v451_v18  ;;  %v313_v23 = vsel %vm312_vm10, %v309_v14, %v311_v22  ;;  %v314_v24 = vsel %vm312_vm10, %v311_v22, %v309_v14  ;;  %v412_v29 = vld [vmem:[#allocation2] sm:$0xff] }
 0x107   : > { %315 = vst [vmem:[#allocation2 + $0x10] sm:$0xf] %v314_v24  ;;  %v413_v32 = vld [vmem:[#allocation2 + $0x8] sm:$0xff]  ;;  %v422_v34 = vmul.f32 %v412_v29, %v1258_v27 }
 0x108   : > { %316 = vst [vmem:[#allocation2 + $0x18] sm:$0xf] %v313_v23  ;;  %v423_v37 = vmul.f32 %v413_v32, %v1262_v30 }
 0x109   : > { %459 = vmatpush.bf16.msra.mxu0 %v434_v25 }
 0x10a   : > { %472 = vmatpush.bf16.msra.mxu1 %v435_v26 }
 0x10e   : > { %v414_v33 = vld [vmem:[#allocation2 + $0x10] sm:$0xff] }
 0x10f   : > { %v424_v35 = vmul.f32 %v414_v33, %v1260_v28  ;;  %v415_v36 = vld [vmem:[#allocation2 + $0x18] sm:$0xff] }
 0x110   : > { %v425_v38 = vmul.f32 %v415_v36, %v1264_v31 }
 0x111   : > { %v432_v39 = vpack.c.bf16 %v424_v35, %v422_v34 }
 0x112   : > { %v433_v40 = vpack.c.bf16 %v425_v38, %v423_v37 }
 0x113   : > { %460 = vmatpush.bf16.msra.mxu0 %v432_v39 }
 0x114   : > { %473 = vmatpush.bf16.msra.mxu1 %v433_v40 }
 0x116   : > { %762 = vmatmul.msk.bf16.vlgmr.msra.gmra.mxu0 %vm439_vm11, %v438_v41 }
 0x117   : > { %763 = vmatmul.msk.bf16.vlgmr.msra.gmra.mxu1 %vm439_vm11, %v438_v41 }
 0x193   : > { %v462_v42 = vpop.f32.mrf.mxu0 }
 0x194   : > { %v479_v43 = vmax.f32 %v462_v42, 0.0  ;;  %v475_v44 = vpop.f32.mrf.mxu1 }
 0x195   : > { %v480_v45 = vmax.f32 %v475_v44, 0.0 }
 0x196   : > { %525 = vst [vmem:[#allocation2 + $0x20] sm:$0xf] %v479_v43  ;;  %527 = vrot.lane.b32.xlu0 %v479_v43, %s1020_s29  ;;  %563 = vrot.lane.b32.xlu1 %v479_v43, %s1023_s6 }
 0x197   : > { %526 = vst [vmem:[#allocation2 + $0x28] sm:$0xf] %v480_v45  ;;  %565 = vrot.lane.b32.xlu2 %v480_v45, %s1023_s6  ;;  %s962_s6 = scalar_lea.hbm %s1377_s4, 16 }
 0x19b   : > { %v464_v46 = vpop.f32.mrf.mxu0 }
 0x19c   : > { %v477_v47 = vpop.f32.mrf.mxu1 }
 0x19e   : > { %551 = vrot.lane.b32.xlu0 %v480_v45, %s1022_s5  ;;  %529 = vrot.lane.b32.xlu1 %v480_v45, %s1020_s29 }
 0x19f   : > { %549 = vrot.lane.b32.xlu2 %v479_v43, %s1022_s5 }
 0x1a6   : > { %489 = vrot.lane.b32.xlu0 %v479_v43, %s1018_s23  ;;  %541 = vrot.lane.b32.xlu1 %v479_v43, %s1021_s30 }
 0x1a7   : > { %543 = vrot.lane.b32.xlu2 %v480_v45, %s1021_s30 }
 0x1ae   : > { %513 = vrot.lane.b32.xlu0 %v480_v45, %s1019_s13  ;;  %491 = vrot.lane.b32.xlu1 %v480_v45, %s1018_s23  ;;  %s657_s23 = sshll.u32 %s246_s28, 4  ;;  %s658_s23 = int_to_ptr.vmem [resolvable:$true] %s657_s23 }
 0x1af   : > { %511 = vrot.lane.b32.xlu2 %v479_v43, %s1019_s13  ;;  %s659_s13 = sshll.u32 %s655_s27, 4  ;;  %s660_s13 = int_to_ptr.hbm [resolvable:$true] %s659_s13 }
 0x1b0   : > { %s956_s29 = sshra.s32 %s660_s13, 4  ;;  %s957_s29 = int_to_ptr.hbm [resolvable:$true] %s956_s29 }
 0x1b1   : > { %s958_s30 = scalar_lea.hbm %s957_s29, 8  ;;  %p963_p12 = scmp.lt.s32.totalorder %s957_s29, %s1377_s4 }
 0x1b2   : > { %p959_p1 = scmp.ne.s32.totalorder %s957_s29, %s958_s30  ;;  %p964_p7 = scmp.lt.s32.totalorder %s962_s6, %s958_s30 }
 0x1b4   : > { %p960_p3 = pnand %p959_p1, %p1122_p4  ;;  %p965_p8 = por %p964_p7, %p963_p12 }
 0x1b6   : > { %503 = vrot.lane.b32.xlu0 %v479_v43, %s1025_s9  ;;  %481 = vrot.lane.b32.xlu1 %v479_v43, %s1024_s7  ;;  %p961_p5 = pneg %p960_p3 }
 0x1b7   : > { %483 = vrot.lane.b32.xlu2 %v480_v45, %s1024_s7 }
 0x1b8   : > { %p966_p9 = pnand %p965_p8, %p961_p5 }
 0x1be   : > { %505 = vrot.lane.b32.xlu1 %v480_v45, %s1025_s9 }
 0x1f1   : > { %v566_v48 = vpop.permute.xlu2 %565 }
 0x1f9   : > { %v550_v53 = vpop.permute.xlu2 %549 }
 0x201   : > { %v544_v12 = vpop.permute.xlu2 %543 }
 0x208   : > { %v528_v49 = vpop.permute.xlu0 %527  ;;  %v564_v50 = vpop.permute.xlu1 %563 }
 0x209   : > { %v567_v51 = vsel %vm407_vm6, %v564_v50, %v566_v48  ;;  %v568_v52 = vsel %vm407_vm6, %v566_v48, %v564_v50  ;;  %v512_v19 = vpop.permute.xlu2 %511 }
 0x20a   : > { %569 = vst [vmem:[#allocation2 + $0x40] sm:$0xf] %v567_v51 }
 0x20b   : > { %570 = vst [vmem:[#allocation2 + $0x48] sm:$0xf] %v568_v52 }
 0x210   : > { %v552_v54 = vpop.permute.xlu0 %551  ;;  %v530_v56 = vpop.permute.xlu1 %529 }
 0x211   : > { %v553_v57 = vsel %vm387_vm2, %v550_v53, %v552_v54  ;;  %v554_v58 = vsel %vm387_vm2, %v552_v54, %v550_v53  ;;  %v531_v60 = vsel %vm353_vm4, %v528_v49, %v530_v56  ;;  %v532_v61 = vsel %vm353_vm4, %v530_v56, %v528_v49  ;;  %v579_v62 = vld [vmem:[#allocation2 + $0x40] sm:$0x1f]  ;;  %v484_v44 = vpop.permute.xlu2 %483 }
 0x212   : > { %v557_v63 = vrot.slane %v553_v57, 4  ;;  %v558_v1 = vrot.slane %v554_v58, 4  ;;  %v535_v5 = vrot.slane %v531_v60, 4  ;;  %v580_v6 = vld [vmem:[#allocation2 + $0x48] sm:$0x1f]  ;;  %v536_v7 = vrot.slane %v532_v61, 4 }
 0x213   : > { %v589_v9 = vmul.f32 %v579_v62, %v1227_v55  ;;  %v590_v11 = vmul.f32 %v580_v6, %v1229_v59 }
 0x214   : > { %561 = vst [vmem:[#allocation2 + $0x30] sm:$0xf0] %v557_v63 }
 0x215   : > { %562 = vst [vmem:[#allocation2 + $0x38] sm:$0xf0] %v558_v1  ;;  %v595_v13 = vpack.c.bf16 %v589_v9, %v589_v9  ;;  %v596_v14 = vpack.c.bf16 %v590_v11, %v590_v11 }
 0x216   : > { %539 = vst [vmem:[#allocation2 + $0x20] sm:$0xf0] %v535_v5 }
 0x217   : > { %540 = vst [vmem:[#allocation2 + $0x28] sm:$0xf0] %v536_v7  ;;  %v602_v15 = vand.u32 %v595_v13, %v1240_v4  ;;  %v605_v16 = vand.u32 %v596_v14, %v1240_v4 }
 0x218   : > { %v490_v17 = vpop.permute.xlu0 %489  ;;  %v542_v18 = vpop.permute.xlu1 %541 }
 0x219   : > { %612 = vmatpush.bf16.msra.mxu2 %v602_v15  ;;  %625 = vmatpush.bf16.msra.mxu3 %v605_v16  ;;  %v545_v55 = vsel %vm373_vm5, %v542_v18, %v544_v12  ;;  %v546_v59 = vsel %vm373_vm5, %v544_v12, %v542_v18 }
 0x21a   : > { %547 = vst [vmem:[#allocation2 + $0x30] sm:$0xf] %v545_v55 }
 0x21b   : > { %548 = vst [vmem:[#allocation2 + $0x38] sm:$0xf] %v546_v59 }
 0x21d   : > { %v575_v21 = vld [vmem:[#allocation2 + $0x20] sm:$0xff] }
 0x21e   : > { %v576_v24 = vld [vmem:[#allocation2 + $0x28] sm:$0xff]  ;;  %v585_v36 = vmul.f32 %v575_v21, %v1236_v2 }
 0x21f   : > { %v586_v40 = vmul.f32 %v576_v24, %v1243_v8 }
 0x220   : > { %v514_v22 = vpop.permute.xlu0 %513  ;;  %v492_v23 = vpop.permute.xlu1 %491 }
 0x221   : > { %v515_v4 = vsel %vm326_vm1, %v512_v19, %v514_v22  ;;  %v516_v25 = vsel %vm326_vm1, %v514_v22, %v512_v19  ;;  %v493_v26 = vsel %vm292_vm0, %v490_v17, %v492_v23  ;;  %v494_v29 = vsel %vm292_vm0, %v492_v23, %v490_v17  ;;  %v577_v32 = vld [vmem:[#allocation2 + $0x30] sm:$0xff] }
 0x222   : > { %v519_v33 = vrot.slane %v516_v25, 4  ;;  %v520_v34 = vrot.slane %v515_v4, 4  ;;  %v497_v35 = vrot.slane %v494_v29, 4  ;;  %v578_v37 = vld [vmem:[#allocation2 + $0x38] sm:$0xff]  ;;  %v498_v38 = vrot.slane %v493_v26, 4 }
 0x223   : > { %v587_v39 = vmul.f32 %v577_v32, %v1238_v3  ;;  %v588_v41 = vmul.f32 %v578_v37, %v1245_v10 }
 0x224   : > { %523 = vst [vmem:[#allocation2 + $0x10] sm:$0xf0] %v519_v33 }
 0x225   : > { %524 = vst [vmem:[#allocation2 + $0x18] sm:$0xf0] %v520_v34  ;;  %v593_v42 = vpack.c.bf16 %v587_v39, %v585_v36  ;;  %v594_v43 = vpack.c.bf16 %v588_v41, %v586_v40 }
 0x226   : > { %501 = vst [vmem:[#allocation2] sm:$0xf0] %v497_v35 }
 0x227   : > { %502 = vst [vmem:[#allocation2 + $0x8] sm:$0xf0] %v498_v38  ;;  %613 = vmatpush.bf16.msra.mxu2 %v593_v42  ;;  %626 = vmatpush.bf16.msra.mxu3 %v594_v43 }
 0x228   : > { %v482_v45 = vpop.permute.xlu1 %481  ;;  %v504_v8 = vpop.permute.xlu0 %503 }
 0x229   : > { %v485_v2 = vsel %vm278_vm8, %v482_v45, %v484_v44  ;;  %v486_v3 = vsel %vm278_vm8, %v484_v44, %v482_v45 }
 0x22a   : > { %487 = vst [vmem:[#allocation2] sm:$0xf] %v486_v3 }
 0x22b   : > { %488 = vst [vmem:[#allocation2 + $0x8] sm:$0xf] %v485_v2 }
 0x230   : > { %v506_v10 = vpop.permute.xlu1 %505 }
 0x231   : > { %v507_v46 = vsel %vm312_vm10, %v504_v8, %v506_v10  ;;  %v508_v47 = vsel %vm312_vm10, %v506_v10, %v504_v8  ;;  %v571_v48 = vld [vmem:[#allocation2] sm:$0xff] }
 0x232   : > { %509 = vst [vmem:[#allocation2 + $0x10] sm:$0xf] %v508_v47  ;;  %v572_v49 = vld [vmem:[#allocation2 + $0x8] sm:$0xff]  ;;  %v581_v51 = vmul.f32 %v571_v48, %v1258_v27 }
 0x233   : > { %510 = vst [vmem:[#allocation2 + $0x18] sm:$0xf] %v507_v46  ;;  %v582_v54 = vmul.f32 %v572_v49, %v1262_v30 }
 0x239   : > { %v573_v50 = vld [vmem:[#allocation2 + $0x10] sm:$0xff] }
 0x23a   : > { %v583_v52 = vmul.f32 %v573_v50, %v1260_v28  ;;  %v574_v53 = vld [vmem:[#allocation2 + $0x18] sm:$0xff] }
 0x23b   : > { %v584_v56 = vmul.f32 %v574_v53, %v1264_v31 }
 0x23c   : > { %v591_v57 = vpack.c.bf16 %v583_v52, %v581_v51 }
 0x23d   : > { %v592_v58 = vpack.c.bf16 %v584_v56, %v582_v54 }
 0x23e   : > { %614 = vmatpush.bf16.msra.mxu2 %v591_v57 }
 0x23f   : > { %627 = vmatpush.bf16.msra.mxu3 %v592_v58 }
 0x241   : > { %764 = vmatmul.msk.bf16.vlgmr.msra.gmra.mxu2 %vm439_vm11, %v597_v20 }
 0x242   : > { %765 = vmatmul.msk.bf16.vlgmr.msra.gmra.mxu3 %vm439_vm11, %v597_v20 }
 0x2c4   : > { %v616_v27 = vpop.f32.mrf.mxu2 }
 0x2c5   : > { %v629_v28 = vpop.f32.mrf.mxu3  ;;  %v633_v30 = vmax.f32 %v616_v27, 0.0 }
 0x2c6   : > { %v634_v31 = vmax.f32 %v629_v28, 0.0 }
 0x2c8   : > { %v637_v60 = vrot.slane %v634_v31, 4 }
 0x2ca   : > { %v639_v61 = vsel %vm638_vm12, %v633_v30, %v637_v60 }
 0x2cb   : > { %v641_v62 = vadd.f32 %v639_v61, %v1167_v0 }
 0x2cc   : > { %v618_v63 = vpop.f32.mrf.mxu2 }
 0x2cd   : > { %v631_v1 = vpop.f32.mrf.mxu3  ;;  %642 = vst [vmem:[%s246_s28] sm:$0xff] %v641_v62 }
 0x2ce   : > { %969 = shalt.err (!%p966_p9)
}
 0x2cf   : > { %783 = dma.vmem_to_hbm [thread:$0]  (%p1122_p4), %s658_s23, 128, %s660_s13, %s644_s22  }
 0x2d0 PF: > { %s671_s14 = sand.u32 1, %s1000_s15   ;;  %p1384_p10 = scmp.ge.s32.totalorder %s1012_s18, 2 }
 0x2d1   : > { %s672_s10 = scalar_lea.sflag [#allocation5], %s671_s14 }
 0x2d2   : > { %p797_p13 = pnand %p1384_p10, %p1126_p6 }
 0x2d4   : > { %p798_p11 = pneg %p797_p13 }
 0x2d6   : > { %995 = dma.done.wait (%p798_p11), %s672_s10, 128  }
 0x2d7   : > { %997 = vsyncadd (%p798_p11), %s672_s10, 4294967168  ;;  %p18_p0 = scmp.ge.s32.totalorder %s1096_s8, 4   ;;  %s1385_s15 = smov %s1004_s16 }
 0x2d8   : > { %s1386_s16 = smov %s1008_s17  ;;  %s1387_s17 = smov %s1107_s11 }
 0x2d9   : > { %s1388_s18 = smov %s1096_s8  ;;  %20 = sbr.rel (!%p18_p0) target bundleno = 6 (0x6), region = 90 }
 0x2de   :  { %678 = vsyncpa [#allocation4], 1 }
 0x2df   :  { %680 = vsyncpa [#allocation4 + $0x1], 1 }
 0x2e0   :  { %681 = vsyncpa [#allocation7], 1 }
 0x2e1   :  { %682 = vsyncpa [#allocation5], 1 }
 0x2e2   :  { %684 = vsyncpa [#allocation5 + $0x1], 1 }

</bundles_post_ra>
